<compile_context>
chip_gen: v7x
topology: tpu7x:2x2x1
jax: 0.10.0
libtpu: 0.0.40
codegen_flags: <defaults>
</compile_context>

<pallas_src>
import jax
import jax.numpy as jnp
from jax.experimental import pallas as pl
from jax.experimental.pallas import tpu as pltpu


def _net_kernel(x_ref, w_ref, b_ref, o_ref):
    # z = x @ w + b   (MXU matmul, f32 accumulate). Pad bias columns are -1e30,
    # so padded logits vanish from the log_softmax denominator below.
    z = jnp.dot(x_ref[...], w_ref[...], preferred_element_type=jnp.float32)
    z = z + b_ref[...]                                  # (Bp,128) + (1,128)
    # Numerically stable log_softmax along the (lane) last dim.
    m = jnp.max(z, axis=-1, keepdims=True)
    s = z - m
    lse = jnp.log(jnp.sum(jnp.exp(s), axis=-1, keepdims=True))
    o_ref[...] = (s - lse).astype(o_ref.dtype)


def network_with_sub1(x, w1, b1):
    """x: (B, C, H, W) float32 with C*H*W == 784. Returns (B, 10) log-probs."""
    B = x.shape[0]
    x2 = x.reshape(B, -1).astype(jnp.float32)   # same semantics as torch .view
    D, K = w1.shape                             # (784, 10)

    # Pad to native TPU tile sizes: sublane multiple of 8, lane multiple of 128.
    Bp = ((B + 7) // 8) * 8          # 2  -> 8
    Dp = ((D + 127) // 128) * 128    # 784 -> 896
    Kp = 128                         # 10 -> 128 (lane-dense output)

    x_p = jnp.zeros((Bp, Dp), jnp.float32).at[:B, :D].set(x2)
    w_p = jnp.zeros((Dp, Kp), jnp.float32).at[:D, :K].set(w1.astype(jnp.float32))
    # Pad biases to a very large negative value so the 118 pad logits are
    # excluded from the log_softmax max / exp-sum.
    b_p = jnp.full((1, Kp), -1e30, jnp.float32).at[0, :K].set(b1.astype(jnp.float32))

    out = pl.pallas_call(
        _net_kernel,
        out_shape=jax.ShapeDtypeStruct((Bp, Kp), jnp.float32),
        in_specs=[
            pl.BlockSpec(memory_space=pltpu.MemorySpace.VMEM),
            pl.BlockSpec(memory_space=pltpu.MemorySpace.VMEM),
            pl.BlockSpec(memory_space=pltpu.MemorySpace.VMEM),
        ],
        out_specs=pl.BlockSpec(memory_space=pltpu.MemorySpace.VMEM),
    )(x_p, w_p, b_p)

    # TODO(synk): if B grows large, switch to a batch-tiled grid (TB rows per
    # step, weights VMEM-resident, "parallel" batch axis for v7x megacore).
    return out[:B, :K]


def _xavier_uniform(key, shape, dtype=jnp.float32):
    # matches torch.nn.init.xavier_uniform_ for a 2D (fan_in, fan_out) weight
    fan_in, fan_out = shape
    limit = (6.0 / (fan_in + fan_out)) ** 0.5
    return jax.random.uniform(key, shape, dtype=dtype, minval=-limit, maxval=limit)


if __name__ == "__main__":
    key = jax.random.PRNGKey(0)
    k_x, k_w = jax.random.split(key)

    # Deterministic parameters (shapes from __init__)
    w1 = _xavier_uniform(k_w, (784, 10))
    b1 = jnp.full((10,), 0.01, dtype=jnp.float32)

    # Small input consistent with the module: (B, C, H, W) = (2, 1, 28, 28)
    x = jax.random.normal(k_x, (2, 1, 28, 28), dtype=jnp.float32)

    y = network_with_sub1(x, w1, b1)
    jax.block_until_ready(y)

    # Pure-JAX reference check
    z_ref = x.reshape(2, -1) @ w1 + b1
    y_ref = jax.nn.log_softmax(z_ref, axis=-1)
    assert y.shape == (2, 10)
    assert bool(jnp.all(jnp.abs(y - y_ref) < 1e-4))
    # Rows of exp(log_softmax) sum to 1
    row_sums = jnp.sum(jnp.exp(y), axis=-1)
    assert bool(jnp.all(jnp.abs(row_sums - 1.0) < 1e-4))

    print("KERNEL_OK")
</pallas_src>

<mosaic_0001>
module attributes {stable_mosaic.version = 11 : i64} {
  func.func @_net_kernel(%arg0: memref<8x896xf32, #tpu.memory_space<vmem>>, %arg1: memref<896x128xf32, #tpu.memory_space<vmem>>, %arg2: memref<1x128xf32, #tpu.memory_space<vmem>>, %arg3: memref<8x128xf32, #tpu.memory_space<vmem>>) attributes {dimension_semantics = [], scalar_prefetch = 0 : i64, scratch_operands = 0 : i64, tpu.core_type = #tpu.core_type<tc>} {
    %c0 = arith.constant 0 : index
    %c0_0 = arith.constant 0 : index
    %0 = vector.load %arg0[%c0, %c0_0] : memref<8x896xf32, #tpu.memory_space<vmem>>, vector<8x896xf32>
    %c0_1 = arith.constant 0 : index
    %c0_2 = arith.constant 0 : index
    %1 = vector.load %arg1[%c0_1, %c0_2] : memref<896x128xf32, #tpu.memory_space<vmem>>, vector<896x128xf32>
    %cst = arith.constant dense<0.000000e+00> : vector<8x128xf32>
    %2 = tpu.matmul %0, %1, %cst {dimension_numbers = #tpu.dot_dimension_numbers<[1], [0], [0], [1], [0, 0, 1, 1], [], []>} : vector<8x896xf32>, vector<896x128xf32>, vector<8x128xf32> -> vector<8x128xf32>
    %c0_3 = arith.constant 0 : index
    %c0_4 = arith.constant 0 : index
    %3 = vector.load %arg2[%c0_3, %c0_4] : memref<1x128xf32, #tpu.memory_space<vmem>>, vector<1x128xf32>
    %4 = vector.broadcast %3 : vector<1x128xf32> to vector<8x128xf32>
    %5 = arith.addf %2, %4 : vector<8x128xf32>
    %cst_5 = arith.constant dense<0xFF800000> : vector<8xf32>
    %6 = vector.multi_reduction <maximumf>, %5, %cst_5 [1] : vector<8x128xf32> to vector<8xf32>
    %7 = vector.shape_cast %6 : vector<8xf32> to vector<8x1xf32>
    %8 = vector.broadcast %7 : vector<8x1xf32> to vector<8x128xf32>
    %9 = arith.subf %5, %8 : vector<8x128xf32>
    %10 = math.exp %9 : vector<8x128xf32>
    %cst_6 = arith.constant dense<0.000000e+00> : vector<8xf32>
    %11 = vector.multi_reduction <add>, %10, %cst_6 [1] : vector<8x128xf32> to vector<8xf32>
    %12 = vector.shape_cast %11 : vector<8xf32> to vector<8x1xf32>
    %13 = math.log %12 : vector<8x1xf32>
    %14 = vector.broadcast %13 : vector<8x1xf32> to vector<8x128xf32>
    %15 = arith.subf %9, %14 : vector<8x128xf32>
    %c0_7 = arith.constant 0 : index
    %c0_8 = arith.constant 0 : index
    %16 = vector.load %arg3[%c0_7, %c0_8] : memref<8x128xf32, #tpu.memory_space<vmem>>, vector<8x128xf32>
    tpu.vector_store %arg3[%c0_7, %c0_8], %15 {strides = array<i32>} : memref<8x128xf32, #tpu.memory_space<vmem>>, vector<8x128xf32>,
    return
  }
}

</mosaic_0001>

<bundles_post_ra>
// kernel: tpu_custom_call.1
= control target key start
LH: loop header
LB: loop body
LE: loop exit
PB: predicated region body
PF: predicated region fallthrough
CT: control target
= control target key end

     0   :  { %8 = vsyncpa [#allocation3], 0  ;;  %s918_s0 = inlined_call_operand.hbm [shape: f32[8,896], index: 0, kind: input, shape index: {}]   ;;  %s919_s1 = inlined_call_operand.hbm [shape: f32[896,128], index: 1, kind: input, shape index: {}]   ;;  %s920_s2 = inlined_call_operand.vmem [shape: f32[1,128], index: 2, kind: input, shape index: {}]   ;;  %s921_s3 = inlined_call_operand.hbm [shape: f32[8,128], index: 3, kind: output, shape index: {}]  }
   0x1   :  { %9 = vsyncpa [#allocation6], 0 }
   0x2   :  { %10 = vsyncpa [#allocation4], 0  ;;  %s836_s12 = smov [#allocation2]   ;;  %s837_s14 = smov [#allocation5]  }
   0x3   :  { %s17_s13 = sshll.u32 %s836_s12, 4  ;;  %s26_s15 = sshll.u32 %s837_s14, 4  ;;  %s18_s13 = int_to_ptr.vmem [resolvable:$true] %s17_s13  ;;  %s864_s15 = int_to_ptr.vmem [resolvable:$true] %s26_s15 }
   0x4   :  { %s764_s18 = scalar_lea.hbm %s918_s0, 896 }
   0x5   :  { %p765_p0 = scmp.ne.s32.totalorder %s918_s0, %s764_s18  ;;  %p768_p1 = scmp.lt.u32.totalorder %s764_s18, %s918_s0 }
   0x7   :  { %p770_p2 = pnand %p768_p1, %p765_p0 }
   0x9   :  { %773 = shalt.err (!%p770_p2)
}
   0xa   :  { %s774_s23 = scalar_lea.vmem %s18_s13, 896  ;;  %p779_p4 = scmp.lt.s32.totalorder %s18_s13, %s18_s13 }
   0xb   :  { %p775_p3 = scmp.ne.s32.totalorder %s18_s13, %s774_s23  ;;  %p780_p5 = scmp.lt.s32.totalorder %s774_s23, %s774_s23 }
   0xd   :  { %p781_p6 = por %p780_p5, %p779_p4 }
   0xf   :  { %p782_p7 = pnand %p781_p6, %p775_p3 }
  0x11   :  { %785 = shalt.err (!%p782_p7)
}
  0x12   :  { %20 = dma.hbm_to_vmem [thread:$0]  %s918_s0, 896, %s18_s13, [#allocation3]  }
  0x13   :  { %s786_s28 = scalar_lea.hbm %s919_s1, 14336 }
  0x14   :  { %p787_p8 = scmp.ne.s32.totalorder %s919_s1, %s786_s28  ;;  %p790_p9 = scmp.lt.u32.totalorder %s786_s28, %s919_s1 }
  0x16   :  { %p792_p10 = pnand %p790_p9, %p787_p8 }
  0x18   :  { %795 = shalt.err (!%p792_p10)
}
  0x19   :  { %s796_s6 = scalar_lea.vmem %s864_s15, 14336  ;;  %p801_p12 = scmp.lt.s32.totalorder %s864_s15, %s864_s15 }
  0x1a   :  { %p797_p11 = scmp.ne.s32.totalorder %s864_s15, %s796_s6  ;;  %p802_p13 = scmp.lt.s32.totalorder %s796_s6, %s796_s6 }
  0x1c   :  { %p803_p0 = por %p802_p13, %p801_p12 }
  0x1e   :  { %p804_p1 = pnand %p803_p0, %p797_p11 }
  0x20   :  { %807 = shalt.err (!%p804_p1)
}
  0x21   :  { %s838_s0 = smov 128   ;;  %s839_s7 = smov 8  }
  0x22   :  { %32 = dma.hbm_to_vmem [thread:$0]  %s919_s1, 14336, %s864_s15, [#allocation6], %s838_s0, %s838_s0, %s839_s7  }
  0x23   :  { %830 = dma.done.wait [#allocation3], 896  }
  0x24   :  { %831 = vsyncadd [#allocation3], 4294966400 }
  0x25   :  { %832 = dma.done.wait [#allocation6], 14336  }
  0x26   :  { %833 = vsyncadd [#allocation6], 4294952960  ;;  %v64_v0 = vld [vmem:[#allocation5 + $0x80] sm:$0xff]  ;;  %v65_v1 = vld [vmem:[#allocation5 + $0x88] sm:$0xff]  ;;  %vm841_vm0 = vmmov 0  }
  0x27   :  { %v48_v2 = vld [vmem:[#allocation5] sm:$0xff]  ;;  %v632_v3 = vpack.c.bf16 %v65_v1, %v64_v0  ;;  %v49_v4 = vld [vmem:[#allocation5 + $0x8] sm:$0xff]  ;;  %v66_v11 = vld [vmem:[#allocation5 + $0x90] sm:$0xff] }
  0x28   :  { %v96_v5 = vld [vmem:[#allocation5 + $0x180] sm:$0xff]  ;;  %v97_v6 = vld [vmem:[#allocation5 + $0x188] sm:$0xff]  ;;  %v634_v7 = vpack.c.bf16 %v49_v4, %v48_v2  ;;  %v67_v13 = vld [vmem:[#allocation5 + $0x98] sm:$0xff] }
  0x29   :  { %v664_v8 = vpack.c.bf16 %v97_v6, %v96_v5  ;;  %v80_v9 = vld [vmem:[#allocation5 + $0x100] sm:$0xff]  ;;  %v81_v10 = vld [vmem:[#allocation5 + $0x108] sm:$0xff]  ;;  %633 = vmatprep.subr.bf16.mxu0 %v632_v3  ;;  %v50_v14 = vld [vmem:[#allocation5 + $0x10] sm:$0xff]  ;;  %v636_v16 = vpack.c.bf16 %v67_v13, %v66_v11 }
  0x2a   :  { %v666_v12 = vpack.c.bf16 %v81_v10, %v80_v9  ;;  %v51_v15 = vld [vmem:[#allocation5 + $0x18] sm:$0xff]  ;;  %635 = vmatpush3.bf16.msra.mxu0 %v634_v7  ;;  %v98_v18 = vld [vmem:[#allocation5 + $0x190] sm:$0xff]  ;;  %v68_v23 = vld [vmem:[#allocation5 + $0xa0] sm:$0xff] }
  0x2b   :  { %665 = vmatprep.subr.bf16.mxu1 %v664_v8  ;;  %v638_v17 = vpack.c.bf16 %v51_v15, %v50_v14  ;;  %v99_v19 = vld [vmem:[#allocation5 + $0x198] sm:$0xff]  ;;  %v82_v20 = vld [vmem:[#allocation5 + $0x110] sm:$0xff]  ;;  %v69_v24 = vld [vmem:[#allocation5 + $0xa8] sm:$0xff]  ;;  %637 = vmatprep.subr.bf16.mxu0 %v636_v16 }
  0x2c   :  { %667 = vmatpush3.bf16.msra.mxu1 %v666_v12  ;;  %v668_v21 = vpack.c.bf16 %v99_v19, %v98_v18  ;;  %v83_v22 = vld [vmem:[#allocation5 + $0x118] sm:$0xff]  ;;  %v640_v26 = vpack.c.bf16 %v69_v24, %v68_v23  ;;  %v52_v27 = vld [vmem:[#allocation5 + $0x20] sm:$0xff]  ;;  %v53_v28 = vld [vmem:[#allocation5 + $0x28] sm:$0xff] }
  0x2d   :  { %v670_v25 = vpack.c.bf16 %v83_v22, %v82_v20  ;;  %v100_v29 = vld [vmem:[#allocation5 + $0x1a0] sm:$0xff]  ;;  %v101_v30 = vld [vmem:[#allocation5 + $0x1a8] sm:$0xff]  ;;  %v642_v33 = vpack.c.bf16 %v53_v28, %v52_v27  ;;  %v70_v35 = vld [vmem:[#allocation5 + $0xb0] sm:$0xff] }
  0x2e   :  { %669 = vmatprep.subr.bf16.mxu1 %v668_v21  ;;  %v84_v31 = vld [vmem:[#allocation5 + $0x120] sm:$0xff]  ;;  %v85_v32 = vld [vmem:[#allocation5 + $0x128] sm:$0xff]  ;;  %639 = vmatpush3.bf16.msra.mxu0 %v638_v17  ;;  %v672_v34 = vpack.c.bf16 %v101_v30, %v100_v29  ;;  %v71_v36 = vld [vmem:[#allocation5 + $0xb8] sm:$0xff] }
  0x2f   :  { %v54_v37 = vld [vmem:[#allocation5 + $0x30] sm:$0xff]  ;;  %641 = vmatprep.subr.bf16.mxu0 %v640_v26  ;;  %v674_v38 = vpack.c.bf16 %v85_v32, %v84_v31  ;;  %v644_v39 = vpack.c.bf16 %v71_v36, %v70_v35  ;;  %v55_v40 = vld [vmem:[#allocation5 + $0x38] sm:$0xff]  ;;  %v72_v46 = vld [vmem:[#allocation5 + $0xc0] sm:$0xff] }
  0x30   :  { %671 = vmatpush3.bf16.msra.mxu1 %v670_v25  ;;  %v102_v41 = vld [vmem:[#allocation5 + $0x1b0] sm:$0xff]  ;;  %v103_v42 = vld [vmem:[#allocation5 + $0x1b8] sm:$0xff]  ;;  %v73_v47 = vld [vmem:[#allocation5 + $0xc8] sm:$0xff]  ;;  %v646_v48 = vpack.c.bf16 %v55_v40, %v54_v37 }
  0x31   :  { %673 = vmatprep.subr.bf16.mxu1 %v672_v34  ;;  %v676_v43 = vpack.c.bf16 %v103_v42, %v102_v41  ;;  %v86_v44 = vld [vmem:[#allocation5 + $0x130] sm:$0xff]  ;;  %v87_v45 = vld [vmem:[#allocation5 + $0x138] sm:$0xff]  ;;  %v104_v49 = vld [vmem:[#allocation5 + $0x1c0] sm:$0xff]  ;;  %v648_v52 = vpack.c.bf16 %v73_v47, %v72_v46 }
  0x32   :  { %643 = vmatpush3.bf16.msra.mxu0 %v642_v33  ;;  %v105_v50 = vld [vmem:[#allocation5 + $0x1c8] sm:$0xff]  ;;  %v678_v51 = vpack.c.bf16 %v87_v45, %v86_v44  ;;  %v56_v53 = vld [vmem:[#allocation5 + $0x40] sm:$0xff]  ;;  %v74_v58 = vld [vmem:[#allocation5 + $0xd0] sm:$0xff] }
  0x33   :  { %645 = vmatprep.subr.bf16.mxu0 %v644_v39  ;;  %v57_v54 = vld [vmem:[#allocation5 + $0x48] sm:$0xff]  ;;  %v88_v55 = vld [vmem:[#allocation5 + $0x140] sm:$0xff]  ;;  %v680_v56 = vpack.c.bf16 %v105_v50, %v104_v49  ;;  %v75_v59 = vld [vmem:[#allocation5 + $0xd8] sm:$0xff] }
  0x34   :  { %675 = vmatpush3.bf16.msra.mxu1 %v674_v38  ;;  %v89_v57 = vld [vmem:[#allocation5 + $0x148] sm:$0xff]  ;;  %v106_v60 = vld [vmem:[#allocation5 + $0x1d0] sm:$0xff]  ;;  %v107_v61 = vld [vmem:[#allocation5 + $0x1d8] sm:$0xff]  ;;  %v650_v62 = vpack.c.bf16 %v57_v54, %v56_v53  ;;  %v652_v0 = vpack.c.bf16 %v75_v59, %v74_v58 }
  0x35   :  { %677 = vmatprep.subr.bf16.mxu1 %v676_v43  ;;  %v682_v63 = vpack.c.bf16 %v89_v57, %v88_v55  ;;  %v58_v1 = vld [vmem:[#allocation5 + $0x50] sm:$0xff]  ;;  %v59_v2 = vld [vmem:[#allocation5 + $0x58] sm:$0xff]  ;;  %v684_v4 = vpack.c.bf16 %v107_v61, %v106_v60  ;;  %v76_v6 = vld [vmem:[#allocation5 + $0xe0] sm:$0xff] }
  0x36   :  { %647 = vmatpush3.bf16.msra.mxu0 %v646_v48  ;;  %v90_v3 = vld [vmem:[#allocation5 + $0x150] sm:$0xff]  ;;  %v91_v5 = vld [vmem:[#allocation5 + $0x158] sm:$0xff]  ;;  %v77_v7 = vld [vmem:[#allocation5 + $0xe8] sm:$0xff]  ;;  %v654_v10 = vpack.c.bf16 %v59_v2, %v58_v1  ;;  %v842_v1 = vmov 0.0  }
  0x37   :  { %649 = vmatprep.subr.bf16.mxu0 %v648_v52  ;;  %v108_v8 = vld [vmem:[#allocation5 + $0x1e0] sm:$0xff]  ;;  %v109_v9 = vld [vmem:[#allocation5 + $0x1e8] sm:$0xff]  ;;  %v42_v12 = vld [vmem:[#allocation2 + $0x8] sm:$0xff]  ;;  %v686_v13 = vpack.c.bf16 %v91_v5, %v90_v3  ;;  %v656_v14 = vpack.c.bf16 %v77_v7, %v76_v6 }
  0x38   :  { %679 = vmatpush3.bf16.msra.mxu1 %v678_v51  ;;  %v60_v11 = vld [vmem:[#allocation5 + $0x60] sm:$0xff]  ;;  %v61_v15 = vld [vmem:[#allocation5 + $0x68] sm:$0xff]  ;;  %v688_v18 = vpack.c.bf16 %v109_v9, %v108_v8  ;;  %v78_v19 = vld [vmem:[#allocation5 + $0xf0] sm:$0xff]  ;;  %231 = vmatprep.mubr.f32.mxu0 %v42_v12  ;;  %v840_v51 = vmov 0.0|0.0  }
  0x39   :  { %681 = vmatprep.subr.bf16.mxu1 %v680_v56  ;;  %v92_v16 = vld [vmem:[#allocation5 + $0x160] sm:$0xff]  ;;  %v93_v17 = vld [vmem:[#allocation5 + $0x168] sm:$0xff]  ;;  %v79_v20 = vld [vmem:[#allocation5 + $0xf8] sm:$0xff]  ;;  %v658_v24 = vpack.c.bf16 %v61_v15, %v60_v11 }
  0x3a   :  { %651 = vmatpush3.bf16.msra.mxu0 %v650_v62  ;;  %v44_v21 = vld [vmem:[#allocation2 + $0x18] sm:$0xff]  ;;  %v110_v22 = vld [vmem:[#allocation5 + $0x1f0] sm:$0xff]  ;;  %v111_v23 = vld [vmem:[#allocation5 + $0x1f8] sm:$0xff]  ;;  %v690_v25 = vpack.c.bf16 %v93_v17, %v92_v16  ;;  %v660_v26 = vpack.c.bf16 %v79_v20, %v78_v19 }
  0x3b   :  { %653 = vmatprep.subr.bf16.mxu0 %v652_v0  ;;  %301 = vmatprep.mubr.f32.mxu1 %v44_v21  ;;  %v62_v27 = vld [vmem:[#allocation5 + $0x70] sm:$0xff]  ;;  %v63_v28 = vld [vmem:[#allocation5 + $0x78] sm:$0xff]  ;;  %v692_v30 = vpack.c.bf16 %v111_v23, %v110_v22  ;;  %v128_v32 = vld [vmem:[#allocation5 + $0x280] sm:$0xff] }
  0x3c   :  { %683 = vmatpush3.bf16.msra.mxu1 %v682_v63  ;;  %v94_v29 = vld [vmem:[#allocation5 + $0x170] sm:$0xff]  ;;  %v95_v31 = vld [vmem:[#allocation5 + $0x178] sm:$0xff]  ;;  %v129_v33 = vld [vmem:[#allocation5 + $0x288] sm:$0xff]  ;;  %v662_v34 = vpack.c.bf16 %v63_v28, %v62_v27 }
  0x3d   :  { %685 = vmatprep.subr.bf16.mxu1 %v684_v4  ;;  %v694_v35 = vpack.c.bf16 %v95_v31, %v94_v29  ;;  %v696_v36 = vpack.c.bf16 %v129_v33, %v128_v32  ;;  %v112_v37 = vld [vmem:[#allocation5 + $0x200] sm:$0xff]  ;;  %v113_v38 = vld [vmem:[#allocation5 + $0x208] sm:$0xff]  ;;  %v130_v39 = vld [vmem:[#allocation5 + $0x290] sm:$0xff] }
  0x3e   :  { %655 = vmatpush3.bf16.msra.mxu0 %v654_v10  ;;  %v131_v40 = vld [vmem:[#allocation5 + $0x298] sm:$0xff]  ;;  %v144_v41 = vld [vmem:[#allocation5 + $0x300] sm:$0xff]  ;;  %v145_v42 = vld [vmem:[#allocation5 + $0x308] sm:$0xff]  ;;  %v698_v44 = vpack.c.bf16 %v113_v38, %v112_v37 }
  0x3f   :  { %657 = vmatprep.subr.bf16.mxu0 %v656_v14  ;;  %v41_v43 = vld [vmem:[#allocation2] sm:$0xff]  ;;  %v43_v45 = vld [vmem:[#allocation2 + $0x10] sm:$0xff]  ;;  %v700_v46 = vpack.c.bf16 %v131_v40, %v130_v39  ;;  %v114_v47 = vld [vmem:[#allocation5 + $0x210] sm:$0xff]  ;;  %v729_v49 = vpack.c.bf16 %v145_v42, %v144_v41 }
  0x40   :  { %687 = vmatpush3.bf16.msra.mxu1 %v686_v13  ;;  %v115_v48 = vld [vmem:[#allocation5 + $0x218] sm:$0xff]  ;;  %v132_v50 = vld [vmem:[#allocation5 + $0x2a0] sm:$0xff]  ;;  %v133_v52 = vld [vmem:[#allocation5 + $0x2a8] sm:$0xff] }
  0x41   :  { %689 = vmatprep.subr.bf16.mxu1 %v688_v18  ;;  %v146_v53 = vld [vmem:[#allocation5 + $0x310] sm:$0xff]  ;;  %v147_v54 = vld [vmem:[#allocation5 + $0x318] sm:$0xff]  ;;  %v702_v55 = vpack.c.bf16 %v115_v48, %v114_v47  ;;  %v116_v56 = vld [vmem:[#allocation5 + $0x220] sm:$0xff]  ;;  %v704_v57 = vpack.c.bf16 %v133_v52, %v132_v50 }
  0x42   :  { %659 = vmatpush3.bf16.msra.mxu0 %v658_v24  ;;  %v117_v58 = vld [vmem:[#allocation5 + $0x228] sm:$0xff]  ;;  %v732_v59 = vpack.c.bf16 %v147_v54, %v146_v53  ;;  %v134_v60 = vld [vmem:[#allocation5 + $0x2b0] sm:$0xff]  ;;  %v135_v61 = vld [vmem:[#allocation5 + $0x2b8] sm:$0xff] }
  0x43   :  { %661 = vmatprep.subr.bf16.mxu0 %v660_v26  ;;  %v148_v62 = vld [vmem:[#allocation5 + $0x320] sm:$0xff]  ;;  %v149_v63 = vld [vmem:[#allocation5 + $0x328] sm:$0xff]  ;;  %v46_v0 = vld [vmem:[#allocation2 + $0x28] sm:$0xff]  ;;  %v706_v2 = vpack.c.bf16 %v117_v58, %v116_v56  ;;  %v708_v3 = vpack.c.bf16 %v135_v61, %v134_v60 }
  0x44   :  { %691 = vmatpush3.bf16.msra.mxu1 %v690_v25  ;;  %v118_v4 = vld [vmem:[#allocation5 + $0x230] sm:$0xff]  ;;  %v119_v5 = vld [vmem:[#allocation5 + $0x238] sm:$0xff]  ;;  %v735_v6 = vpack.c.bf16 %v149_v63, %v148_v62  ;;  %v136_v7 = vld [vmem:[#allocation5 + $0x2c0] sm:$0xff] }
  0x45   :  { %693 = vmatprep.subr.bf16.mxu1 %v692_v30  ;;  %v137_v8 = vld [vmem:[#allocation5 + $0x2c8] sm:$0xff]  ;;  %v150_v9 = vld [vmem:[#allocation5 + $0x330] sm:$0xff]  ;;  %v151_v10 = vld [vmem:[#allocation5 + $0x338] sm:$0xff]  ;;  %v710_v11 = vpack.c.bf16 %v119_v5, %v118_v4 }
  0x46   :  { %663 = vmatpush3.bf16.msra.mxu0 %v662_v34  ;;  %v712_v12 = vpack.c.bf16 %v137_v8, %v136_v7  ;;  %v120_v13 = vld [vmem:[#allocation5 + $0x240] sm:$0xff]  ;;  %v121_v14 = vld [vmem:[#allocation5 + $0x248] sm:$0xff]  ;;  %v738_v15 = vpack.c.bf16 %v151_v10, %v150_v9  ;;  %v138_v16 = vld [vmem:[#allocation5 + $0x2d0] sm:$0xff] }
  0x47   :  { %697 = vmatprep.subr.bf16.mxu0 %v696_v36  ;;  %v139_v17 = vld [vmem:[#allocation5 + $0x2d8] sm:$0xff]  ;;  %v152_v18 = vld [vmem:[#allocation5 + $0x340] sm:$0xff]  ;;  %v153_v19 = vld [vmem:[#allocation5 + $0x348] sm:$0xff]  ;;  %v714_v20 = vpack.c.bf16 %v121_v14, %v120_v13 }
  0x48   :  { %695 = vmatpush3.bf16.msra.mxu1 %v694_v35  ;;  %v716_v21 = vpack.c.bf16 %v139_v17, %v138_v16  ;;  %v122_v22 = vld [vmem:[#allocation5 + $0x250] sm:$0xff]  ;;  %v123_v23 = vld [vmem:[#allocation5 + $0x258] sm:$0xff]  ;;  %v741_v24 = vpack.c.bf16 %v153_v19, %v152_v18  ;;  %v140_v25 = vld [vmem:[#allocation5 + $0x2e0] sm:$0xff] }
  0x49   :  { %728 = vmatprep.subr.bf16.mxu1 %v840_v51  ;;  %232 = vmatmul.mubr.f32.vlgmr.msra.gmra.mrb[0].mxu0 %v41_v43  ;;  %v141_v26 = vld [vmem:[#allocation5 + $0x2e8] sm:$0xff]  ;;  %v154_v27 = vld [vmem:[#allocation5 + $0x350] sm:$0xff]  ;;  %v155_v28 = vld [vmem:[#allocation5 + $0x358] sm:$0xff]  ;;  %v718_v29 = vpack.c.bf16 %v123_v23, %v122_v22 }
  0x4a   :  { %699 = vmatpush3.bf16.msra.mxu0 %v698_v44  ;;  %371 = vmatprep.mubr.f32.mxu0 %v46_v0  ;;  %v720_v30 = vpack.c.bf16 %v141_v26, %v140_v25  ;;  %v124_v31 = vld [vmem:[#allocation5 + $0x260] sm:$0xff]  ;;  %v125_v32 = vld [vmem:[#allocation5 + $0x268] sm:$0xff]  ;;  %v744_v33 = vpack.c.bf16 %v155_v28, %v154_v27  ;;  %v142_v34 = vld [vmem:[#allocation5 + $0x2f0] sm:$0xff] }
  0x4b   :  { %302 = vmatmul.mubr.f32.vlgmr.msra.gmra.mrb[0].mxu1 %v43_v45  ;;  %701 = vmatprep.subr.bf16.mxu0 %v700_v46  ;;  %v143_v35 = vld [vmem:[#allocation5 + $0x2f8] sm:$0xff]  ;;  %v156_v36 = vld [vmem:[#allocation5 + $0x360] sm:$0xff]  ;;  %v157_v37 = vld [vmem:[#allocation5 + $0x368] sm:$0xff]  ;;  %v722_v38 = vpack.c.bf16 %v125_v32, %v124_v31 }
  0x4c   :  { %730 = vmatpush3.bf16.msra.mxu1 %v729_v49  ;;  %629 = vmatprep.mubr.msk.f32.mxu1 %vm841_vm0, %v842_v1  ;;  %v724_v39 = vpack.c.bf16 %v143_v35, %v142_v34  ;;  %v126_v40 = vld [vmem:[#allocation5 + $0x270] sm:$0xff]  ;;  %v127_v41 = vld [vmem:[#allocation5 + $0x278] sm:$0xff]  ;;  %v747_v42 = vpack.c.bf16 %v157_v37, %v156_v36  ;;  %v45_v47 = vld [vmem:[#allocation2 + $0x20] sm:$0xff] }
  0x4d   :  { %731 = vmatprep.subr.bf16.mxu1 %v840_v51  ;;  %v158_v43 = vld [vmem:[#allocation5 + $0x370] sm:$0xff]  ;;  %v159_v44 = vld [vmem:[#allocation5 + $0x378] sm:$0xff]  ;;  %v726_v45 = vpack.c.bf16 %v127_v41, %v126_v40  ;;  %v474_v50 = vld [vmem:[%s920_s2] ss:$0 sm:$0xff]  ;;  %s843_s2 = smov [#allocation7]  }
  0x4e   :  { %703 = vmatpush3.bf16.msra.mxu0 %v702_v55  ;;  %v750_v46 = vpack.c.bf16 %v159_v44, %v158_v43  ;;  %v47_v48 = vld [vmem:[#allocation2 + $0x30] sm:$0xff]  ;;  %s464_s11 = sshll.u32 %s843_s2, 4  ;;  %s465_s11 = int_to_ptr.vmem [resolvable:$true] %s464_s11 }
  0x4f   :  { %705 = vmatprep.subr.bf16.mxu0 %v704_v57  ;;  %s808_s12 = scalar_lea.vmem %s465_s11, 128  ;;  %p813_p3 = scmp.lt.s32.totalorder %s465_s11, %s465_s11 }
  0x50   :  { %733 = vmatpush3.bf16.msra.mxu1 %v732_v59  ;;  %p809_p2 = scmp.ne.s32.totalorder %s465_s11, %s808_s12  ;;  %p814_p4 = scmp.lt.s32.totalorder %s808_s12, %s808_s12 }
  0x51   :  { %734 = vmatprep.subr.bf16.mxu1 %v840_v51 }
  0x52   :  { %707 = vmatpush3.bf16.msra.mxu0 %v706_v2  ;;  %p815_p5 = por %p814_p4, %p813_p3 }
  0x53   :  { %709 = vmatprep.subr.bf16.mxu0 %v708_v3 }
  0x54   :  { %736 = vmatpush3.bf16.msra.mxu1 %v735_v6  ;;  %p816_p6 = pnand %p815_p5, %p809_p2 }
  0x55   :  { %737 = vmatprep.subr.bf16.mxu1 %v840_v51 }
  0x56   :  { %711 = vmatpush3.bf16.msra.mxu0 %v710_v11 }
  0x57   :  { %713 = vmatprep.subr.bf16.mxu0 %v712_v12 }
  0x58   :  { %739 = vmatpush3.bf16.msra.mxu1 %v738_v15 }
  0x59   :  { %740 = vmatprep.subr.bf16.mxu1 %v840_v51 }
  0x5a   :  { %715 = vmatpush3.bf16.msra.mxu0 %v714_v20 }
  0x5b   :  { %717 = vmatprep.subr.bf16.mxu0 %v716_v21 }
  0x5c   :  { %742 = vmatpush3.bf16.msra.mxu1 %v741_v24 }
  0x5d   :  { %743 = vmatprep.subr.bf16.mxu1 %v840_v51 }
  0x5e   :  { %719 = vmatpush3.bf16.msra.mxu0 %v718_v29 }
  0x5f   :  { %721 = vmatprep.subr.bf16.mxu0 %v720_v30 }
  0x60   :  { %745 = vmatpush3.bf16.msra.mxu1 %v744_v33 }
  0x61   :  { %746 = vmatprep.subr.bf16.mxu1 %v840_v51 }
  0x62   :  { %723 = vmatpush3.bf16.msra.mxu0 %v722_v38 }
  0x63   :  { %725 = vmatprep.subr.bf16.mxu0 %v724_v39 }
  0x64   :  { %748 = vmatpush3.bf16.msra.mxu1 %v747_v42 }
  0x65   :  { %749 = vmatprep.subr.bf16.mxu1 %v840_v51 }
  0x66   :  { %727 = vmatpush3.bf16.msra.mxu0 %v726_v45 }
  0x68   :  { %751 = vmatpush3.bf16.msra.mxu1 %v750_v46 }
  0x69   :  { %372 = vmatmul.mubr.f32.vlgmr.msra.gmra.mrb[2].mxu0 %v45_v47 }
  0x6b   :  { %630 = vmatmul.mubr.f32.vlgmr.msra.gmra.mrb[2].mxu1 %v47_v48 }
 0x11c   :  { %v507_v49 = vpop.f32.mrb[0].mxu0 }
 0x11d   :  { %v508_v52 = vpop.f32.mrb[1].mxu0 }
 0x11e   :  { %v542_v53 = vpop.f32.mrb[0].mxu1  ;;  %v509_v54 = vadd.f32 %v508_v52, %v507_v49 }
 0x11f   :  { %v543_v55 = vpop.f32.mrb[1].mxu1 }
 0x120   :  { %v544_v56 = vadd.f32 %v543_v55, %v542_v53  ;;  %v234_v57 = vadd.f32 %v509_v54, %v474_v50 }
 0x122   :  { %v304_v58 = vadd.f32 %v544_v56, %v234_v57 }
 0x13c   :  { %v577_v59 = vpop.f32.mrb[2].mxu0 }
 0x13d   :  { %v578_v51 = vpop.f32.mrb[3].mxu0 }
 0x13e   :  { %v443_v60 = vpop.f32.mrb[2].mxu1  ;;  %v579_v61 = vadd.f32 %v578_v51, %v577_v59 }
 0x13f   :  { %v631_v62 = vpop.f32.mrb[3].mxu1 }
 0x140   :  { %v374_v63 = vadd.f32 %v579_v61, %v304_v58 }
 0x142   :  { %v444_v0 = vadd.f32 %v443_v60, %v374_v63 }
 0x144   :  { %447 = vmax.xlane.f32.xlu0 %v444_v0 }
 0x1d1   :  { %v448_v1 = vpop.xlane.xlu0 %447 }
 0x1d2   :  { %v449_v2 = vsub.f32 %v444_v0, %v448_v1 }
 0x1d4   :  { %v450_v3 = vmul.f32 1.442695, %v449_v2 }
 0x1d6   :  { %760 = vpow2.f32 %v450_v3 }
 0x1e0   :  { %v761_v4 = vpop.eup %760 }
 0x1e1   :  { %452 = vadd.xlane.f32.xlu0 %v761_v4 }
 0x26e   :  { %v453_v5 = vpop.xlane.xlu0 %452 }
 0x26f   :  { %762 = vlog2.f32 %v453_v5 }
 0x279   :  { %v763_v6 = vpop.eup %762 }
 0x27a   :  { %v455_v7 = vmul.f32 0.6931472, %v763_v6 }
 0x27c   :  { %v456_v8 = vsub.f32 %v449_v2, %v455_v7 }
 0x27e   :  { %457 = vst [vmem:[#allocation7] sm:$0xff] %v456_v8 }
 0x27f   :  { %819 = shalt.err (!%p816_p6)
}
 0x280   :  { %s820_s15 = scalar_lea.hbm %s921_s3, 128 }
 0x281   :  { %p821_p7 = scmp.ne.s32.totalorder %s921_s3, %s820_s15  ;;  %p824_p8 = scmp.lt.u32.totalorder %s820_s15, %s921_s3 }
 0x283   :  { %p826_p9 = pnand %p824_p8, %p821_p7 }
 0x285   :  { %829 = shalt.err (!%p826_p9)
}
 0x286   :  { %467 = dma.vmem_to_hbm [thread:$0]  %s465_s11, 128, %s921_s3, [#allocation4]  }
 0x287   :  { %834 = dma.done.wait [#allocation4], 128  }
 0x288   :  { %835 = vsyncadd [#allocation4], 4294967168 }
 0x289   :  { %471 = vsyncpa [#allocation3], 1 }
 0x28a   :  { %472 = vsyncpa [#allocation6], 1 }
 0x28b   :  { %473 = vsyncpa [#allocation4], 1 }

</bundles_post_ra>
